<compile_context>
chip_gen: v7x
topology: tpu7x:2x2x1
jax: 0.10.0
libtpu: 0.0.40
codegen_flags: <defaults>
</compile_context>

<pallas_src>
import numpy as np
import jax
import jax.numpy as jnp
from jax import lax
from jax.experimental import pallas as pl
from jax.experimental.pallas import tpu as pltpu

NULL_ATTENTION = -2.0 ** 22


def _round_up(x: int, m: int) -> int:
    return ((x + m - 1) // m) * m


# -----------------------------------------------------------------------------
# Pallas kernel: one batch tile (TB batch elements) per grid step.
# -----------------------------------------------------------------------------
def coatt2_kernel(b3_ref,                                  # scalar prefetch (SMEM): [1] f32
                  sess_ref, hist_ref,                      # [TB, 1] int32
                  item_ref,                                # [TB, dim] f32
                  xs_ref,                                  # [TB, s, dim] f32
                  uh2_ref,                                 # [TB, h, 2*dim] f32 ([hist ; hist_click])
                  w1x_ref, w1u_ref, w1i_ref,               # [dim, H1p] matmul dtype
                  b1_ref,                                  # [1, H1p] f32
                  w2_ref,                                  # [H1p, H2p] matmul dtype
                  b2_ref, w3_ref,                          # [1, H2p] f32
                  rep_out_ref, score_out_ref):             # [TB, 2*dim], [TB, h]
    TB, s_len, dim = xs_ref.shape
    _, h_len, _ = uh2_ref.shape
    H1 = w1x_ref.shape[1]
    H2 = w2_ref.shape[1]
    mm_dtype = w1x_ref.dtype
    null = jnp.float32(NULL_ATTENTION)
    b3 = b3_ref[0]                                         # scalar (SMEM)

    uh2 = uh2_ref[...]                                     # f32, reused in the tail
    uh = uh2[:, :, :dim]                                   # user_hist chunk

    # ---- Layer 1: three fused matmuls; the [TB,s,h,3*dim] concat tensor is
    # never materialized (per-chunk pre-activations are broadcast-added). ------
    xs_part = jnp.dot(xs_ref[...].astype(mm_dtype).reshape(TB * s_len, dim),
                      w1x_ref[...], preferred_element_type=jnp.float32)      # [TB*s, H1]
    uh_part = jnp.dot(uh.astype(mm_dtype).reshape(TB * h_len, dim),
                      w1u_ref[...], preferred_element_type=jnp.float32)      # [TB*h, H1]
    it_part = jnp.dot(item_ref[...].astype(mm_dtype),
                      w1i_ref[...], preferred_element_type=jnp.float32)      # [TB, H1]

    base = (uh_part.reshape(TB, h_len, H1)
            + (it_part + b1_ref[...]).reshape(TB, 1, H1))                    # [TB,h,H1]
    pre = (xs_part.reshape(TB, s_len, 1, H1)
           + base.reshape(TB, 1, h_len, H1))                                 # [TB,s,h,H1]
    h1 = jnp.maximum(pre, 0.0).astype(mm_dtype).reshape(TB * s_len * h_len, H1)

    # ---- Layer 2: one [TB*s*h, H1] x [H1, H2] matmul --------------------------
    h2 = jnp.maximum(
        jnp.dot(h1, w2_ref[...], preferred_element_type=jnp.float32) + b2_ref[...],
        0.0)                                                                  # [TB*s*h, H2]

    # ---- Layer 3 (N=1): VPU multiply + lane reduce, no MXU --------------------
    att = jnp.sum(h2.reshape(TB * s_len, h_len, H2) * w3_ref[...].reshape(1, 1, H2),
                  axis=-1) + b3                                               # [TB*s, h]
    att = att.reshape(TB, s_len, h_len)

    # ---- Session mask, then max over the session axis -------------------------
    sess = sess_ref[...].reshape(TB, 1, 1)
    s_idx = lax.broadcasted_iota(jnp.int32, (TB, s_len, h_len), 1)
    att = jnp.where(s_idx < sess, att, null)
    score = jnp.max(att, axis=1)                                              # [TB, h]

    # ---- History mask + softmax over the history (lane) axis ------------------
    hist = hist_ref[...].reshape(TB, 1)
    h_idx = lax.broadcasted_iota(jnp.int32, (TB, h_len), 1)
    score = jnp.where(h_idx < hist, score, null)

    m = jnp.max(score, axis=1, keepdims=True)
    e = jnp.exp(score - m)
    wts = e / jnp.sum(e, axis=1, keepdims=True)   # exact divide: [TB,1], negligible cost

    # ---- Attention-weighted [hist ; hist_click] representation (one store) ----
    rep_out_ref[...] = jnp.sum(uh2 * wts.reshape(TB, h_len, 1), axis=1)       # [TB, 2*dim]
    score_out_ref[...] = score                                                # [TB, h]


# -----------------------------------------------------------------------------
# Tile selection: VMEM-budgeted batch tile + explicit vmem limit.
# -----------------------------------------------------------------------------
def _select_batch_tile(B, s_len, h_len, dim, H1p, H2p, batch_tile):
    # Rough live-VMEM bytes per batch element inside the kernel.
    per_elem = (
        2 * s_len * h_len * H1p * 4                        # pre + h1 (f32)
        + s_len * h_len * H1p * 2                          # h1 matmul-dtype copy
        + s_len * h_len * H2p * 4                          # h2
        + (s_len + h_len + 1) * H1p * 4                    # layer-1 partials
        + 2 * (s_len * dim + 2 * h_len * dim + dim) * 4    # double-buffered inputs
    )
    try:
        info = pltpu.get_tpu_info()
        vmem_cap = int(getattr(info, "vmem_capacity_bytes", 0)) or 64 * 1024 * 1024
    except Exception:
        vmem_cap = 64 * 1024 * 1024                        # conservative (v7x per-core)
    vmem_limit = (3 * vmem_cap) // 4                       # ~48 MiB v7x, ~96 MiB v5e/v6e
    budget = (3 * vmem_limit) // 5                         # headroom for weights/scratch

    if B <= 8:
        return B, vmem_limit                               # one exact small tile
    cap = max(8, ((budget // per_elem) // 8) * 8)
    two_steps = max(8, _round_up(-(-B // 2), 8))           # >=2 grid steps (v7x megacore)
    tb = min(batch_tile, cap, two_steps)
    tb = max(8, (tb // 8) * 8)
    return tb, vmem_limit


# -----------------------------------------------------------------------------
# Wrapper: weight prep (tiny, plain XLA) + pallas_call with a batched grid.
# -----------------------------------------------------------------------------
def coatt2_forward(params, item_emb, x_session, session_len,
                   user_hist, hist_len, user_hist_click, *,
                   batch_tile=128, matmul_dtype=jnp.bfloat16):
    B, s_len, dim = x_session.shape
    h_len = user_hist.shape[1]
    H1 = params["w1"].shape[0]            # 200
    H2 = params["w2"].shape[0]            # 80
    H1p = _round_up(H1, 128)              # 200 -> 256 (exact: zero pad)
    H2p = _round_up(H2, 128)              # 80  -> 128 (exact: zero pad)

    def pad_last(a, n):
        return jnp.pad(a, [(0, 0)] * (a.ndim - 1) + [(0, n - a.shape[-1])])

    # Split / pre-transpose / zero-pad the first Linear weight [H1, 3*dim].
    w1 = params["w1"].astype(jnp.float32)
    w1x_t = pad_last(w1[:, 0 * dim:1 * dim].T, H1p).astype(matmul_dtype)   # [dim, H1p]
    w1u_t = pad_last(w1[:, 1 * dim:2 * dim].T, H1p).astype(matmul_dtype)
    w1i_t = pad_last(w1[:, 2 * dim:3 * dim].T, H1p).astype(matmul_dtype)
    b1 = pad_last(params["b1"].reshape(1, H1).astype(jnp.float32), H1p)    # [1, H1p]
    w2_t = jnp.pad(params["w2"].T.astype(jnp.float32),
                   [(0, H1p - H1), (0, H2p - H2)]).astype(matmul_dtype)    # [H1p, H2p]
    b2 = pad_last(params["b2"].reshape(1, H2).astype(jnp.float32), H2p)
    w3_row = pad_last(params["w3"].reshape(1, H2).astype(jnp.float32), H2p)
    b3 = params["b3"].reshape(1).astype(jnp.float32)                       # SMEM scalar

    sess = session_len.astype(jnp.int32).reshape(B, 1)
    hist = hist_len.astype(jnp.int32).reshape(B, 1)
    item = item_emb.astype(jnp.float32)
    xs = x_session.astype(jnp.float32)
    # [hist ; hist_click] on the feature axis: one input stream, one lane-denser
    # weighted-sum output in the kernel tail.
    uh2 = jnp.concatenate([user_hist.astype(jnp.float32),
                           user_hist_click.astype(jnp.float32)], axis=-1)  # [B,h,2*dim]

    TB, vmem_limit = _select_batch_tile(B, s_len, h_len, dim, H1p, H2p, batch_tile)
    grid = pl.cdiv(B, TB)   # ragged last block handled by Pallas (no jnp.pad copy)

    def full(shp):
        return pl.BlockSpec(shp, lambda i, *_: (0,) * len(shp))

    grid_spec = pltpu.PrefetchScalarGridSpec(
        num_scalar_prefetch=1,                                   # b3 -> SMEM
        grid=(grid,),
        in_specs=[
            pl.BlockSpec((TB, 1), lambda i, *_: (i, 0)),                  # session_len
            pl.BlockSpec((TB, 1), lambda i, *_: (i, 0)),                  # hist_len
            pl.BlockSpec((TB, dim), lambda i, *_: (i, 0)),                # item_emb
            pl.BlockSpec((TB, s_len, dim), lambda i, *_: (i, 0, 0)),      # x_session
            pl.BlockSpec((TB, h_len, 2 * dim), lambda i, *_: (i, 0, 0)),  # [hist;click]
            full((dim, H1p)),                                             # w1x_t
            full((dim, H1p)),                                             # w1u_t
            full((dim, H1p)),                                             # w1i_t
            full((1, H1p)),                                               # b1
            full((H1p, H2p)),                                             # w2_t
            full((1, H2p)),                                               # b2
            full((1, H2p)),                                               # w3
        ],
        out_specs=[
            pl.BlockSpec((TB, 2 * dim), lambda i, *_: (i, 0)),            # [hist;click] rep
            pl.BlockSpec((TB, h_len), lambda i, *_: (i, 0)),              # score
        ],
    )

    rep, score = pl.pallas_call(
        coatt2_kernel,
        grid_spec=grid_spec,
        out_shape=(
            jax.ShapeDtypeStruct((B, 2 * dim), jnp.float32),
            jax.ShapeDtypeStruct((B, h_len), jnp.float32),
        ),
        compiler_params=pltpu.CompilerParams(
            dimension_semantics=("parallel",),
            vmem_limit_bytes=int(vmem_limit)),
    )(b3, sess, hist, item, xs, uh2,
      w1x_t, w1u_t, w1i_t, b1, w2_t, b2, w3_row)

    return rep[:, :dim], rep[:, dim:], score


# -----------------------------------------------------------------------------
# Pure-JAX reference (mirrors the torch forward, dropout in eval mode).
# -----------------------------------------------------------------------------
def coatt2_reference(params, item_emb, x_session, session_len,
                     user_hist, hist_len, user_hist_click):
    B, s_len, dim = x_session.shape
    h_len = user_hist.shape[1]
    uh_t = jnp.tile(user_hist.reshape(-1, 1, h_len, dim), (1, s_len, 1, 1))
    xs_t = jnp.tile(x_session.reshape(-1, s_len, 1, dim), (1, 1, h_len, 1))
    ie_t = jnp.tile(item_emb.reshape(-1, 1, 1, dim), (1, s_len, h_len, 1))
    inp = jnp.concatenate([xs_t, uh_t, ie_t], axis=3)
    h1 = jax.nn.relu(inp @ params["w1"].T + params["b1"])
    h2 = jax.nn.relu(h1 @ params["w2"].T + params["b2"])
    att = (h2 @ params["w3"].T + params["b3"])[..., 0]            # [B, s, h]
    mask_s = (jnp.arange(s_len)[None, :] < session_len[:, None])[:, :, None]
    mask_h = (jnp.arange(h_len)[None, :] < hist_len[:, None])[:, None, :]
    att = jnp.where(mask_s, att, NULL_ATTENTION)
    att = jnp.where(mask_h, att, NULL_ATTENTION)
    score = jnp.max(att, axis=1)                                  # [B, h]
    w = jax.nn.softmax(score, axis=1)
    uh_rep = jnp.sum(user_hist * w[:, :, None], axis=1)
    uhc_rep = jnp.sum(user_hist_click * w[:, :, None], axis=1)
    return uh_rep, uhc_rep, score


def init_params(key, dim, h1=200, h2=80):
    ks = jax.random.split(key, 6)
    scale = 0.05
    return {
        "w1": scale * jax.random.normal(ks[0], (h1, 3 * dim), jnp.float32),
        "b1": scale * jax.random.normal(ks[1], (h1,), jnp.float32),
        "w2": scale * jax.random.normal(ks[2], (h2, h1), jnp.float32),
        "b2": scale * jax.random.normal(ks[3], (h2,), jnp.float32),
        "w3": scale * jax.random.normal(ks[4], (1, h2), jnp.float32),
        "b3": scale * jax.random.normal(ks[5], (1,), jnp.float32),
    }


def _run_case(key, B, S, H, D, batch_tile):
    ks = jax.random.split(key, 8)
    params = init_params(ks[0], D)
    item_emb = jax.random.normal(ks[1], (B, D), jnp.float32)
    x_session = jax.random.normal(ks[2], (B, S, D), jnp.float32)
    user_hist = jax.random.normal(ks[3], (B, H, D), jnp.float32)
    user_hist_click = jax.random.normal(ks[4], (B, H, D), jnp.float32)
    session_len = jax.random.randint(ks[5], (B,), 1, S + 1).astype(jnp.int32)
    hist_len = jax.random.randint(ks[6], (B,), 1, H + 1).astype(jnp.int32)

    outs = coatt2_forward(params, item_emb, x_session, session_len,
                          user_hist, hist_len, user_hist_click,
                          batch_tile=batch_tile)
    outs = jax.block_until_ready(outs)

    refs = coatt2_reference(params, item_emb, x_session, session_len,
                            user_hist, hist_len, user_hist_click)
    names = ("user_hist_rep", "user_hist_click_rep", "score")
    for name, got, want in zip(names, outs, refs):
        # bf16 MXU operands / f32 accumulation: slightly looser than the f32 ref.
        np.testing.assert_allclose(np.asarray(got), np.asarray(want),
                                   rtol=2e-3, atol=2e-3,
                                   err_msg=f"B={B} {name}")


if __name__ == "__main__":
    key = jax.random.PRNGKey(0)
    k1, k2 = jax.random.split(key)
    # Small case (single exact tile).
    _run_case(k1, B=2, S=8, H=8, D=32, batch_tile=128)
    # Larger case: exercises the VMEM-budgeted tile, >=2 grid steps and the
    # un-padded ragged last block (no jnp.pad of activations).
    _run_case(k2, B=20, S=8, H=8, D=32, batch_tile=128)
    print("KERNEL_OK")
</pallas_src>

<mosaic_0001>
module attributes {stable_mosaic.version = 11 : i64} {
  func.func @coatt2_kernel(%arg0: i32, %arg1: memref<1xf32, #tpu.memory_space<smem>>, %arg2: memref<2x1xi32, #tpu.memory_space<vmem>>, %arg3: memref<2x1xi32, #tpu.memory_space<vmem>>, %arg4: memref<2x32xf32, #tpu.memory_space<vmem>>, %arg5: memref<2x8x32xf32, #tpu.memory_space<vmem>>, %arg6: memref<2x8x64xf32, #tpu.memory_space<vmem>>, %arg7: memref<32x256xbf16, #tpu.memory_space<vmem>>, %arg8: memref<32x256xbf16, #tpu.memory_space<vmem>>, %arg9: memref<32x256xbf16, #tpu.memory_space<vmem>>, %arg10: memref<1x256xf32, #tpu.memory_space<vmem>>, %arg11: memref<256x128xbf16, #tpu.memory_space<vmem>>, %arg12: memref<1x128xf32, #tpu.memory_space<vmem>>, %arg13: memref<1x128xf32, #tpu.memory_space<vmem>>, %arg14: memref<2x64xf32, #tpu.memory_space<vmem>>, %arg15: memref<2x8xf32, #tpu.memory_space<vmem>>) attributes {dimension_semantics = [#tpu.dimension_semantics<parallel>], iteration_bounds = array<i64: 1>, scalar_prefetch = 1 : i64, scratch_operands = 0 : i64, tpu.core_type = #tpu.core_type<tc>, window_params = [{transform_indices = @transform_0, window_bounds = array<i64: 2, 1>}, {transform_indices = @transform_1, window_bounds = array<i64: 2, 1>}, {transform_indices = @transform_2, window_bounds = array<i64: 2, 32>}, {transform_indices = @transform_3, window_bounds = array<i64: 2, 8, 32>}, {transform_indices = @transform_4, window_bounds = array<i64: 2, 8, 64>}, {pipeline_mode = #tpu.pipeline_mode<synchronous>, transform_indices = @transform_5, window_bounds = array<i64: 32, 256>}, {pipeline_mode = #tpu.pipeline_mode<synchronous>, transform_indices = @transform_6, window_bounds = array<i64: 32, 256>}, {pipeline_mode = #tpu.pipeline_mode<synchronous>, transform_indices = @transform_7, window_bounds = array<i64: 32, 256>}, {pipeline_mode = #tpu.pipeline_mode<synchronous>, transform_indices = @transform_8, window_bounds = array<i64: 1, 256>}, {pipeline_mode = #tpu.pipeline_mode<synchronous>, transform_indices = @transform_9, window_bounds = array<i64: 256, 128>}, {pipeline_mode = #tpu.pipeline_mode<synchronous>, transform_indices = @transform_10, window_bounds = array<i64: 1, 128>}, {pipeline_mode = #tpu.pipeline_mode<synchronous>, transform_indices = @transform_11, window_bounds = array<i64: 1, 128>}, {transform_indices = @transform_12, window_bounds = array<i64: 2, 64>}, {transform_indices = @transform_13, window_bounds = array<i64: 2, 8>}]} {
    %c0 = arith.constant 0 : index
    %0 = memref.load %arg1[%c0] : memref<1xf32, #tpu.memory_space<smem>>
    %c0_0 = arith.constant 0 : index
    %c0_1 = arith.constant 0 : index
    %c0_2 = arith.constant 0 : index
    %1 = vector.load %arg6[%c0_0, %c0_1, %c0_2] : memref<2x8x64xf32, #tpu.memory_space<vmem>>, vector<2x8x64xf32>
    %2 = vector.extract_strided_slice %1 {offsets = [0, 0, 0], sizes = [2, 8, 32], strides = [1, 1, 1]} : vector<2x8x64xf32> to vector<2x8x32xf32>
    %c0_3 = arith.constant 0 : index
    %c0_4 = arith.constant 0 : index
    %c0_5 = arith.constant 0 : index
    %3 = vector.load %arg5[%c0_3, %c0_4, %c0_5] : memref<2x8x32xf32, #tpu.memory_space<vmem>>, vector<2x8x32xf32>
    %4 = arith.truncf %3 : vector<2x8x32xf32> to vector<2x8x32xbf16>
    %5 = vector.shape_cast %4 : vector<2x8x32xbf16> to vector<16x32xbf16>
    %c0_6 = arith.constant 0 : index
    %c0_7 = arith.constant 0 : index
    %6 = vector.load %arg7[%c0_6, %c0_7] : memref<32x256xbf16, #tpu.memory_space<vmem>>, vector<32x256xbf16>
    %cst = arith.constant dense<0.000000e+00> : vector<16x256xf32>
    %7 = tpu.matmul %5, %6, %cst {dimension_numbers = #tpu.dot_dimension_numbers<[1], [0], [0], [1], [0, 0, 1, 1], [], []>} : vector<16x32xbf16>, vector<32x256xbf16>, vector<16x256xf32> -> vector<16x256xf32>
    %8 = arith.truncf %2 : vector<2x8x32xf32> to vector<2x8x32xbf16>
    %9 = vector.shape_cast %8 : vector<2x8x32xbf16> to vector<16x32xbf16>
    %c0_8 = arith.constant 0 : index
    %c0_9 = arith.constant 0 : index
    %10 = vector.load %arg8[%c0_8, %c0_9] : memref<32x256xbf16, #tpu.memory_space<vmem>>, vector<32x256xbf16>
    %cst_10 = arith.constant dense<0.000000e+00> : vector<16x256xf32>
    %11 = tpu.matmul %9, %10, %cst_10 {dimension_numbers = #tpu.dot_dimension_numbers<[1], [0], [0], [1], [0, 0, 1, 1], [], []>} : vector<16x32xbf16>, vector<32x256xbf16>, vector<16x256xf32> -> vector<16x256xf32>
    %c0_11 = arith.constant 0 : index
    %c0_12 = arith.constant 0 : index
    %12 = vector.load %arg4[%c0_11, %c0_12] : memref<2x32xf32, #tpu.memory_space<vmem>>, vector<2x32xf32>
    %13 = arith.truncf %12 : vector<2x32xf32> to vector<2x32xbf16>
    %c0_13 = arith.constant 0 : index
    %c0_14 = arith.constant 0 : index
    %14 = vector.load %arg9[%c0_13, %c0_14] : memref<32x256xbf16, #tpu.memory_space<vmem>>, vector<32x256xbf16>
    %cst_15 = arith.constant dense<0.000000e+00> : vector<2x256xf32>
    %15 = tpu.matmul %13, %14, %cst_15 {dimension_numbers = #tpu.dot_dimension_numbers<[1], [0], [0], [1], [0, 0, 1, 1], [], []>} : vector<2x32xbf16>, vector<32x256xbf16>, vector<2x256xf32> -> vector<2x256xf32>
    %16 = vector.shape_cast %11 : vector<16x256xf32> to vector<2x8x256xf32>
    %c0_16 = arith.constant 0 : index
    %c0_17 = arith.constant 0 : index
    %17 = vector.load %arg10[%c0_16, %c0_17] : memref<1x256xf32, #tpu.memory_space<vmem>>, vector<1x256xf32>
    %18 = vector.broadcast %17 : vector<1x256xf32> to vector<2x256xf32>
    %19 = arith.addf %15, %18 : vector<2x256xf32>
    %20 = vector.shape_cast %19 : vector<2x256xf32> to vector<2x1x256xf32>
    %21 = vector.broadcast %20 : vector<2x1x256xf32> to vector<2x8x256xf32>
    %22 = arith.addf %16, %21 : vector<2x8x256xf32>
    %23 = vector.shape_cast %7 : vector<16x256xf32> to vector<2x8x1x256xf32>
    %24 = vector.shape_cast %22 : vector<2x8x256xf32> to vector<2x1x8x256xf32>
    %25 = vector.broadcast %23 : vector<2x8x1x256xf32> to vector<2x8x8x256xf32>
    %26 = vector.broadcast %24 : vector<2x1x8x256xf32> to vector<2x8x8x256xf32>
    %27 = arith.addf %25, %26 : vector<2x8x8x256xf32>
    %cst_18 = arith.constant 0.000000e+00 : f32
    %28 = vector.broadcast %cst_18 : f32 to vector<2x8x8x256xf32>
    %29 = arith.maximumf %27, %28 : vector<2x8x8x256xf32>
    %30 = arith.truncf %29 : vector<2x8x8x256xf32> to vector<2x8x8x256xbf16>
    %31 = vector.shape_cast %30 : vector<2x8x8x256xbf16> to vector<128x256xbf16>
    %c0_19 = arith.constant 0 : index
    %c0_20 = arith.constant 0 : index
    %32 = vector.load %arg11[%c0_19, %c0_20] : memref<256x128xbf16, #tpu.memory_space<vmem>>, vector<256x128xbf16>
    %cst_21 = arith.constant dense<0.000000e+00> : vector<128x128xf32>
    %33 = tpu.matmul %31, %32, %cst_21 {dimension_numbers = #tpu.dot_dimension_numbers<[1], [0], [0], [1], [0, 0, 1, 1], [], []>} : vector<128x256xbf16>, vector<256x128xbf16>, vector<128x128xf32> -> vector<128x128xf32>
    %c0_22 = arith.constant 0 : index
    %c0_23 = arith.constant 0 : index
    %34 = vector.load %arg12[%c0_22, %c0_23] : memref<1x128xf32, #tpu.memory_space<vmem>>, vector<1x128xf32>
    %35 = vector.broadcast %34 : vector<1x128xf32> to vector<128x128xf32>
    %36 = arith.addf %33, %35 : vector<128x128xf32>
    %cst_24 = arith.constant 0.000000e+00 : f32
    %37 = vector.broadcast %cst_24 : f32 to vector<128x128xf32>
    %38 = arith.maximumf %36, %37 : vector<128x128xf32>
    %39 = vector.shape_cast %38 : vector<128x128xf32> to vector<16x8x128xf32>
    %c0_25 = arith.constant 0 : index
    %c0_26 = arith.constant 0 : index
    %40 = vector.load %arg13[%c0_25, %c0_26] : memref<1x128xf32, #tpu.memory_space<vmem>>, vector<1x128xf32>
    %41 = vector.shape_cast %40 : vector<1x128xf32> to vector<1x1x128xf32>
    %42 = vector.broadcast %41 : vector<1x1x128xf32> to vector<16x8x128xf32>
    %43 = arith.mulf %39, %42 : vector<16x8x128xf32>
    %cst_27 = arith.constant dense<0.000000e+00> : vector<16x8xf32>
    %44 = vector.multi_reduction <add>, %43, %cst_27 [2] : vector<16x8x128xf32> to vector<16x8xf32>
    %45 = vector.broadcast %0 : f32 to vector<16x8xf32>
    %46 = arith.addf %44, %45 : vector<16x8xf32>
    %47 = vector.shape_cast %46 : vector<16x8xf32> to vector<2x8x8xf32>
    %c0_28 = arith.constant 0 : index
    %c0_29 = arith.constant 0 : index
    %48 = vector.load %arg2[%c0_28, %c0_29] : memref<2x1xi32, #tpu.memory_space<vmem>>, vector<2x1xi32>
    %49 = vector.shape_cast %48 : vector<2x1xi32> to vector<2x1x1xi32>
    %50 = tpu.iota {dimensions = array<i32: 1>} : vector<2x8x8xi32>
    %51 = vector.broadcast %49 : vector<2x1x1xi32> to vector<2x8x8xi32>
    %52 = arith.cmpi slt, %50, %51 : vector<2x8x8xi32>
    %cst_30 = arith.constant 0xCA800000 : f32
    %53 = vector.broadcast %cst_30 : f32 to vector<2x8x8xf32>
    %54 = arith.select %52, %47, %53 : vector<2x8x8xi1>, vector<2x8x8xf32>
    %cst_31 = arith.constant dense<0xFF800000> : vector<2x8xf32>
    %55 = vector.multi_reduction <maximumf>, %54, %cst_31 [1] : vector<2x8x8xf32> to vector<2x8xf32>
    %c0_32 = arith.constant 0 : index
    %c0_33 = arith.constant 0 : index
    %56 = vector.load %arg3[%c0_32, %c0_33] : memref<2x1xi32, #tpu.memory_space<vmem>>, vector<2x1xi32>
    %57 = tpu.iota {dimensions = array<i32: 1>} : vector<2x8xi32>
    %58 = vector.broadcast %56 : vector<2x1xi32> to vector<2x8xi32>
    %59 = arith.cmpi slt, %57, %58 : vector<2x8xi32>
    %cst_34 = arith.constant 0xCA800000 : f32
    %60 = vector.broadcast %cst_34 : f32 to vector<2x8xf32>
    %61 = arith.select %59, %55, %60 : vector<2x8xi1>, vector<2x8xf32>
    %cst_35 = arith.constant dense<0xFF800000> : vector<2xf32>
    %62 = vector.multi_reduction <maximumf>, %61, %cst_35 [1] : vector<2x8xf32> to vector<2xf32>
    %63 = vector.shape_cast %62 : vector<2xf32> to vector<2x1xf32>
    %64 = vector.broadcast %63 : vector<2x1xf32> to vector<2x8xf32>
    %65 = arith.subf %61, %64 : vector<2x8xf32>
    %66 = math.exp %65 : vector<2x8xf32>
    %cst_36 = arith.constant dense<0.000000e+00> : vector<2xf32>
    %67 = vector.multi_reduction <add>, %66, %cst_36 [1] : vector<2x8xf32> to vector<2xf32>
    %68 = vector.shape_cast %67 : vector<2xf32> to vector<2x1xf32>
    %69 = vector.broadcast %68 : vector<2x1xf32> to vector<2x8xf32>
    %70 = arith.divf %66, %69 : vector<2x8xf32>
    %71 = vector.shape_cast %70 : vector<2x8xf32> to vector<2x8x1xf32>
    %72 = vector.broadcast %71 : vector<2x8x1xf32> to vector<2x8x64xf32>
    %73 = arith.mulf %1, %72 : vector<2x8x64xf32>
    %cst_37 = arith.constant dense<0.000000e+00> : vector<2x64xf32>
    %74 = vector.multi_reduction <add>, %73, %cst_37 [1] : vector<2x8x64xf32> to vector<2x64xf32>
    %c0_38 = arith.constant 0 : index
    %c0_39 = arith.constant 0 : index
    %75 = vector.load %arg14[%c0_38, %c0_39] : memref<2x64xf32, #tpu.memory_space<vmem>>, vector<2x64xf32>
    tpu.vector_store %arg14[%c0_38, %c0_39], %74 {strides = array<i32>} : memref<2x64xf32, #tpu.memory_space<vmem>>, vector<2x64xf32>,
    %c0_40 = arith.constant 0 : index
    %c0_41 = arith.constant 0 : index
    %76 = vector.load %arg15[%c0_40, %c0_41] : memref<2x8xf32, #tpu.memory_space<vmem>>, vector<2x8xf32>
    tpu.vector_store %arg15[%c0_40, %c0_41], %61 {strides = array<i32>} : memref<2x8xf32, #tpu.memory_space<vmem>>, vector<2x8xf32>,
    return
  }
  func.func @transform_0(%arg0: i32, %arg1: memref<1xf32, #tpu.memory_space<smem>>) -> (i32, i32) {
    %c0_i32 = arith.constant 0 : i32
    %c0_i32_0 = arith.constant 0 : i32
    return %arg0, %c0_i32 : i32, i32
  }
  func.func @transform_1(%arg0: i32, %arg1: memref<1xf32, #tpu.memory_space<smem>>) -> (i32, i32) {
    %c0_i32 = arith.constant 0 : i32
    %c0_i32_0 = arith.constant 0 : i32
    return %arg0, %c0_i32 : i32, i32
  }
  func.func @transform_2(%arg0: i32, %arg1: memref<1xf32, #tpu.memory_space<smem>>) -> (i32, i32) {
    %c0_i32 = arith.constant 0 : i32
    %c0_i32_0 = arith.constant 0 : i32
    return %arg0, %c0_i32 : i32, i32
  }
  func.func @transform_3(%arg0: i32, %arg1: memref<1xf32, #tpu.memory_space<smem>>) -> (i32, i32, i32) {
    %c0_i32 = arith.constant 0 : i32
    %c0_i32_0 = arith.constant 0 : i32
    %c0_i32_1 = arith.constant 0 : i32
    return %arg0, %c0_i32, %c0_i32_0 : i32, i32, i32
  }
  func.func @transform_4(%arg0: i32, %arg1: memref<1xf32, #tpu.memory_space<smem>>) -> (i32, i32, i32) {
    %c0_i32 = arith.constant 0 : i32
    %c0_i32_0 = arith.constant 0 : i32
    %c0_i32_1 = arith.constant 0 : i32
    return %arg0, %c0_i32, %c0_i32_0 : i32, i32, i32
  }
  func.func @transform_5(%arg0: i32, %arg1: memref<1xf32, #tpu.memory_space<smem>>) -> (i32, i32) {
    %c0_i32 = arith.constant 0 : i32
    %c0_i32_0 = arith.constant 0 : i32
    %c0_i32_1 = arith.constant 0 : i32
    return %c0_i32, %c0_i32_0 : i32, i32
  }
  func.func @transform_6(%arg0: i32, %arg1: memref<1xf32, #tpu.memory_space<smem>>) -> (i32, i32) {
    %c0_i32 = arith.constant 0 : i32
    %c0_i32_0 = arith.constant 0 : i32
    %c0_i32_1 = arith.constant 0 : i32
    return %c0_i32, %c0_i32_0 : i32, i32
  }
  func.func @transform_7(%arg0: i32, %arg1: memref<1xf32, #tpu.memory_space<smem>>) -> (i32, i32) {
    %c0_i32 = arith.constant 0 : i32
    %c0_i32_0 = arith.constant 0 : i32
    %c0_i32_1 = arith.constant 0 : i32
    return %c0_i32, %c0_i32_0 : i32, i32
  }
  func.func @transform_8(%arg0: i32, %arg1: memref<1xf32, #tpu.memory_space<smem>>) -> (i32, i32) {
    %c0_i32 = arith.constant 0 : i32
    %c0_i32_0 = arith.constant 0 : i32
    %c0_i32_1 = arith.constant 0 : i32
    return %c0_i32, %c0_i32_0 : i32, i32
  }
  func.func @transform_9(%arg0: i32, %arg1: memref<1xf32, #tpu.memory_space<smem>>) -> (i32, i32) {
    %c0_i32 = arith.constant 0 : i32
    %c0_i32_0 = arith.constant 0 : i32
    %c0_i32_1 = arith.constant 0 : i32
    return %c0_i32, %c0_i32_0 : i32, i32
  }
  func.func @transform_10(%arg0: i32, %arg1: memref<1xf32, #tpu.memory_space<smem>>) -> (i32, i32) {
    %c0_i32 = arith.constant 0 : i32
    %c0_i32_0 = arith.constant 0 : i32
    %c0_i32_1 = arith.constant 0 : i32
    return %c0_i32, %c0_i32_0 : i32, i32
  }
  func.func @transform_11(%arg0: i32, %arg1: memref<1xf32, #tpu.memory_space<smem>>) -> (i32, i32) {
    %c0_i32 = arith.constant 0 : i32
    %c0_i32_0 = arith.constant 0 : i32
    %c0_i32_1 = arith.constant 0 : i32
    return %c0_i32, %c0_i32_0 : i32, i32
  }
  func.func @transform_12(%arg0: i32, %arg1: memref<1xf32, #tpu.memory_space<smem>>) -> (i32, i32) {
    %c0_i32 = arith.constant 0 : i32
    %c0_i32_0 = arith.constant 0 : i32
    return %arg0, %c0_i32 : i32, i32
  }
  func.func @transform_13(%arg0: i32, %arg1: memref<1xf32, #tpu.memory_space<smem>>) -> (i32, i32) {
    %c0_i32 = arith.constant 0 : i32
    %c0_i32_0 = arith.constant 0 : i32
    return %arg0, %c0_i32 : i32, i32
  }
}

</mosaic_0001>

<bundles_post_ra>
// kernel: tpu_custom_call.1
= control target key start
LH: loop header
LB: loop body
LE: loop exit
PB: predicated region body
PF: predicated region fallthrough
CT: control target
= control target key end

     0   :  { %21 = vsyncpa [#allocation5], 0  ;;  %s2341_s0 = inlined_call_operand.<no memory space> [shape: f32[1], index: 0, kind: input, shape index: {}]   ;;  %s2342_s1 = inlined_call_operand.vmem [shape: s32[2,1], index: 1, kind: input, shape index: {}]   ;;  %s2343_s2 = inlined_call_operand.vmem [shape: s32[2,1], index: 2, kind: input, shape index: {}]   ;;  %s2344_s3 = inlined_call_operand.vmem [shape: f32[2,32], index: 3, kind: input, shape index: {}]   ;;  %s2345_s4 = inlined_call_operand.hbm [shape: f32[2,8,32], index: 4, kind: input, shape index: {}]   ;;  %s2346_s5 = inlined_call_operand.hbm [shape: f32[2,8,64], index: 5, kind: input, shape index: {}]   ;;  %s2347_s6 = inlined_call_operand.hbm [shape: bf16[32,256], index: 6, kind: input, shape index: {}]   ;;  %s2348_s7 = inlined_call_operand.vmem [shape: bf16[32,256], index: 7, kind: input, shape index: {}]   ;;  %s2349_s8 = inlined_call_operand.hbm [shape: bf16[32,256], index: 8, kind: input, shape index: {}]   ;;  %s2350_s9 = inlined_call_operand.vmem [shape: f32[1,256], index: 9, kind: input, shape index: {}]   ;;  %s2351_s10 = inlined_call_operand.hbm [shape: bf16[256,128], index: 10, kind: input, shape index: {}]   ;;  %s2352_s11 = inlined_call_operand.vmem [shape: f32[1,128], index: 11, kind: input, shape index: {}]   ;;  %s2353_s12 = inlined_call_operand.vmem [shape: f32[1,128], index: 12, kind: input, shape index: {}]   ;;  %s2354_s13 = inlined_call_operand.hbm [shape: f32[2,64], index: 13, kind: output, shape index: {0}]   ;;  %s2355_s14 = inlined_call_operand.hbm [shape: f32[2,8], index: 14, kind: output, shape index: {1}]  }
   0x1   :  { %22 = vsyncpa [#allocation8], 0 }
   0x2   :  { %23 = vsyncpa [#allocation11], 0 }
   0x3   :  { %24 = vsyncpa [#allocation6], 0 }
   0x4   :  { %25 = vsyncpa [#allocation15], 0  ;;  %s1806_s29 = smov [#allocation7]   ;;  %s1807_s15 = smov [#allocation10]  }
   0x5   :  { %s49_s30 = sshll.u32 %s1806_s29, 4  ;;  %s75_s16 = sshll.u32 %s1807_s15, 4  ;;  %s50_s30 = int_to_ptr.vmem [resolvable:$true] %s49_s30  ;;  %s1894_s16 = int_to_ptr.vmem [resolvable:$true] %s75_s16 }
   0x6   :  { %s1642_s19 = scalar_lea.hbm %s2346_s5, 256 }
   0x7   :  { %p1643_p0 = scmp.ne.s32.totalorder %s2346_s5, %s1642_s19  ;;  %p1646_p1 = scmp.lt.u32.totalorder %s1642_s19, %s2346_s5 }
   0x9   :  { %p1648_p2 = pnand %p1646_p1, %p1643_p0 }
   0xb   :  { %1651 = shalt.err (!%p1648_p2)
}
   0xc   :  { %s1652_s24 = scalar_lea.vmem %s50_s30, 256  ;;  %p1657_p4 = scmp.lt.s32.totalorder %s50_s30, %s50_s30 }
   0xd   :  { %p1653_p3 = scmp.ne.s32.totalorder %s50_s30, %s1652_s24  ;;  %p1658_p5 = scmp.lt.s32.totalorder %s1652_s24, %s1652_s24 }
   0xf   :  { %p1659_p6 = por %p1658_p5, %p1657_p4 }
  0x11   :  { %p1660_p7 = pnand %p1659_p6, %p1653_p3 }
  0x13   :  { %1663 = shalt.err (!%p1660_p7)
}
  0x14   :  { %s1808_s25 = smov 128   ;;  %s1809_s26 = smov 8  }
  0x15   :  { %55 = dma.hbm_to_vmem [thread:$0]  %s2346_s5, 256, %s50_s30, [#allocation8], %s1808_s25, %s1808_s25, %s1809_s26  }
  0x16   :  { %s1664_s17 = scalar_lea.hbm %s2349_s8, 512 }
  0x17   :  { %p1665_p8 = scmp.ne.s32.totalorder %s2349_s8, %s1664_s17  ;;  %p1668_p9 = scmp.lt.u32.totalorder %s1664_s17, %s2349_s8 }
  0x19   :  { %p1670_p10 = pnand %p1668_p9, %p1665_p8 }
  0x1b   :  { %1673 = shalt.err (!%p1670_p10)
}
  0x1c   :  { %s1674_s22 = scalar_lea.vmem %s1894_s16, 512  ;;  %p1679_p12 = scmp.lt.s32.totalorder %s1894_s16, %s1894_s16 }
  0x1d   :  { %p1675_p11 = scmp.ne.s32.totalorder %s1894_s16, %s1674_s22  ;;  %p1680_p13 = scmp.lt.s32.totalorder %s1674_s22, %s1674_s22 }
  0x1f   :  { %p1681_p0 = por %p1680_p13, %p1679_p12 }
  0x21   :  { %p1682_p1 = pnand %p1681_p0, %p1675_p11 }
  0x23   :  { %1685 = shalt.err (!%p1682_p1)
}
  0x24   :  { %81 = dma.hbm_to_vmem [thread:$0]  %s2349_s8, 512, %s1894_s16, [#allocation11], %s1808_s25, %s1808_s25, %s1809_s26  }
  0x25   :  { %s1810_s23 = smov [#allocation4]   ;;  %s1811_s27 = smov [#allocation9]  }
  0x26   :  { %s37_s24 = sshll.u32 %s1810_s23, 4  ;;  %s61_s28 = sshll.u32 %s1811_s27, 4  ;;  %s38_s24 = int_to_ptr.vmem [resolvable:$true] %s37_s24  ;;  %s1931_s28 = int_to_ptr.vmem [resolvable:$true] %s61_s28 }
  0x27   :  { %s1686_s17 = scalar_lea.hbm %s2345_s4, 256 }
  0x28   :  { %p1687_p2 = scmp.ne.s32.totalorder %s2345_s4, %s1686_s17  ;;  %p1690_p3 = scmp.lt.u32.totalorder %s1686_s17, %s2345_s4 }
  0x2a   :  { %p1692_p4 = pnand %p1690_p3, %p1687_p2 }
  0x2c   :  { %1695 = shalt.err (!%p1692_p4)
}
  0x2d   :  { %s1696_s8 = scalar_lea.vmem %s38_s24, 256  ;;  %p1701_p6 = scmp.lt.s32.totalorder %s38_s24, %s38_s24 }
  0x2e   :  { %p1697_p5 = scmp.ne.s32.totalorder %s38_s24, %s1696_s8  ;;  %p1702_p7 = scmp.lt.s32.totalorder %s1696_s8, %s1696_s8 }
  0x30   :  { %p1703_p8 = por %p1702_p7, %p1701_p6 }
  0x32   :  { %p1704_p9 = pnand %p1703_p8, %p1697_p5 }
  0x34   :  { %1707 = shalt.err (!%p1704_p9)
}
  0x35   :  { %43 = dma.hbm_to_vmem [thread:$0]  %s2345_s4, 256, %s38_s24, [#allocation5], %s1808_s25, %s1808_s25, %s1809_s26  }
  0x36   :  { %s1708_s23 = scalar_lea.hbm %s2347_s6, 512 }
  0x37   :  { %p1709_p10 = scmp.ne.s32.totalorder %s2347_s6, %s1708_s23  ;;  %p1712_p11 = scmp.lt.u32.totalorder %s1708_s23, %s2347_s6 }
  0x39   :  { %p1714_p12 = pnand %p1712_p11, %p1709_p10 }
  0x3b   :  { %1717 = shalt.err (!%p1714_p12)
}
  0x3c   :  { %s1718_s18 = scalar_lea.vmem %s1931_s28, 512  ;;  %p1723_p0 = scmp.lt.s32.totalorder %s1931_s28, %s1931_s28 }
  0x3d   :  { %p1719_p13 = scmp.ne.s32.totalorder %s1931_s28, %s1718_s18  ;;  %p1724_p1 = scmp.lt.s32.totalorder %s1718_s18, %s1718_s18 }
  0x3f   :  { %p1725_p2 = por %p1724_p1, %p1723_p0 }
  0x41   :  { %p1726_p3 = pnand %p1725_p2, %p1719_p13 }
  0x43   :  { %1729 = shalt.err (!%p1726_p3)
}
  0x44   :  { %67 = dma.hbm_to_vmem [thread:$0]  %s2347_s6, 512, %s1931_s28, [#allocation8], %s1808_s25, %s1808_s25, %s1809_s26  }
  0x45   :  { %s1812_s19 = smov [#allocation12]   ;;  %s1730_s16 = scalar_lea.hbm %s2351_s10, 2048 }
  0x46   :  { %s89_s20 = sshll.u32 %s1812_s19, 4  ;;  %p1731_p4 = scmp.ne.s32.totalorder %s2351_s10, %s1730_s16  ;;  %s90_s20 = int_to_ptr.vmem [resolvable:$true] %s89_s20 }
  0x47   :  { %p1734_p5 = scmp.lt.u32.totalorder %s1730_s16, %s2351_s10 }
  0x49   :  { %p1736_p6 = pnand %p1734_p5, %p1731_p4 }
  0x4b   :  { %1739 = shalt.err (!%p1736_p6)
}
  0x4c   :  { %s1740_s27 = scalar_lea.vmem %s90_s20, 2048  ;;  %p1745_p8 = scmp.lt.s32.totalorder %s90_s20, %s90_s20 }
  0x4d   :  { %p1741_p7 = scmp.ne.s32.totalorder %s90_s20, %s1740_s27  ;;  %p1746_p9 = scmp.lt.s32.totalorder %s1740_s27, %s1740_s27 }
  0x4f   :  { %p1747_p10 = por %p1746_p9, %p1745_p8 }
  0x51   :  { %p1748_p11 = pnand %p1747_p10, %p1741_p7 }
  0x53   :  { %1751 = shalt.err (!%p1748_p11)
}
  0x54   :  { %s1813_s6 = smov 64   ;;  %s1814_s25 = smov 4  }
  0x55   :  { %95 = dma.hbm_to_vmem [thread:$0]  %s2351_s10, 2048, %s90_s20, [#allocation11], %s1813_s6, %s1813_s6, %s1814_s25  }
  0x56   :  { %1796 = dma.done.wait [#allocation5], 256  }
  0x57   :  { %1797 = vsyncadd [#allocation5], 4294967040 }
  0x58   :  { %1798 = dma.done.wait [#allocation8], 768  }
  0x59   :  { %1799 = vsyncadd [#allocation8], 4294966528 }
  0x5a   :  { %1800 = dma.done.wait [#allocation11], 2560  }
  0x5b   :  { %1801 = vsyncadd [#allocation11], 4294964736  ;;  %v1815_v0 = vmov 0   ;;  %v1602_v1 = vld [vmem:[#allocation9 + $0x4] ss:$8 sps:$4 sm:$0xff]   ;;  %vm152_vm0 = vcmask 261120   ;;  %v284_v37 = vlaneseq }
  0x5c   :  { %188 = vmatprep.mubr.bf16.mxu0 %v1815_v0  ;;  %265 = vmatprep.mubr.bf16.mxu1 %v1815_v0  ;;  %v1604_v2 = vld [vmem:[#allocation9] ss:$8 sps:$4 sm:$0xff]   ;;  %v1605_v3 = vld [vmem:[#allocation9 + $0x14] ss:$8 sps:$4 sm:$0xff]   ;;  %v1607_v4 = vld [vmem:[#allocation9 + $0x10] ss:$8 sps:$4 sm:$0xff]  }
  0x5d   :  { %1601 = vset.pattern.permute.xlu1 %v1815_v0  ;;  %1600 = vset.pattern.permute.xlu0 %v1815_v0  ;;  %v119_v5 = vld [vmem:[#allocation4] sm:$0xff]  ;;  %v120_v6 = vld [vmem:[#allocation4 + $0x8] sm:$0xff]  ;;  %v1613_v11 = vld [vmem:[#allocation10 + $0x14] ss:$8 sps:$4 sm:$0xff]   ;;  %v1816_v38 = vmov 1966171168  }
  0x5e   :  { %156 = vmatprep.subr.bf16.mxu0 %v1602_v1  ;;  %v1610_v7 = vld [vmem:[#allocation10 + $0x4] ss:$8 sps:$4 sm:$0xff]   ;;  %v1608_v8 = vld [vmem:[#allocation10] ss:$8 sps:$4 sm:$0xff]   ;;  %v1489_v9 = vpack.c.bf16 %v120_v6, %v119_v5  ;;  %v1617_v13 = vld [vmem:[%s2348_s7 + $0x14] ss:$8 sps:$4 sm:$0xff]   ;;  %v362_v39 = vunpack.c.l.s4 %v1816_v38 }
  0x5f   :  { %157 = vmatpush1.bf16.msra.mxu0 %v1604_v2  ;;  %v1614_v10 = vld [vmem:[%s2348_s7 + $0x4] ss:$8 sps:$4 sm:$0xff]   ;;  %v1616_v12 = vld [vmem:[%s2348_s7] ss:$8 sps:$4 sm:$0xff]   ;;  %v1619_v14 = vld [vmem:[%s2348_s7 + $0x10] ss:$8 sps:$4 sm:$0xff]  }
  0x60   :  { %158 = vmatprep.subr.bf16.mxu0 %v1605_v3  ;;  %233 = vmatprep.subr.bf16.mxu1 %v1614_v10  ;;  %v1611_v15 = vld [vmem:[#allocation10 + $0x10] ss:$8 sps:$4 sm:$0xff]   ;;  %v276_v16 = vld [vmem:[%s2344_s3] sm:$0x3]  ;;  %v1622_v23 = vld [vmem:[#allocation12 + $0x48] sm:$0xff]   ;;  %v1999_v40 = vshrl.u32 %v284_v37, 7  ;;  %v363_v41 = vunpack.c.0.s8 %v362_v39 }
  0x61   :  { %234 = vmatpush1.bf16.msra.mxu1 %v1616_v12  ;;  %v117_v17 = vld [vmem:[#allocation7] sm:$0xff]  ;;  %v118_v18 = vld [vmem:[#allocation7 + $0x8] sm:$0xff]  ;;  %v1620_v19 = vld [vmem:[#allocation12 + $0x40] sm:$0xff]   ;;  %v277_v22 = vpack.c.bf16 %v276_v16, %v276_v16  ;;  %vm1306_vm1 = vcmask 1041409   ;;  %vm1308_vm2 = vcmask 1042434   ;;  %vm1310_vm3 = vcmask 1043459  }
  0x62   :  { %235 = vmatprep.subr.bf16.mxu1 %v1617_v13  ;;  %v1621_v20 = vld [vmem:[#allocation12] sm:$0xff]   ;;  %v1490_v21 = vpack.c.bf16 %v118_v18, %v117_v17  ;;  %v1623_v24 = vld [vmem:[#allocation12 + $0x8] sm:$0xff]   ;;  %v1624_v25 = vld [vmem:[#allocation12 + $0x50] sm:$0xff]   ;;  %v2002_v43 = vsub.s32 %v363_v41, %v1999_v40  ;;  %v2005_v45 = vsub.s32 0, %v1999_v40  ;;  %v2008_v46 = vsub.s32 1, %v1999_v40 }
  0x63   :  { %159 = vmatpush1.bf16.msra.mxu0 %v1607_v4  ;;  %v1625_v26 = vld [vmem:[#allocation12 + $0x10] sm:$0xff]   ;;  %v1626_v27 = vld [vmem:[#allocation12 + $0x58] sm:$0xff]   ;;  %v1628_v29 = vld [vmem:[#allocation12 + $0x60] sm:$0xff]   ;;  %vm1312_vm4 = vcmask 1044484   ;;  %vm1314_vm5 = vcmask 1045509   ;;  %vm1316_vm6 = vcmask 1046534  }
  0x64   :  { %317 = vmatprep.subr.bf16.mxu0 %v1610_v7  ;;  %v1627_v28 = vld [vmem:[#allocation12 + $0x18] sm:$0xff]   ;;  %v1629_v30 = vld [vmem:[#allocation12 + $0x20] sm:$0xff]   ;;  %v1630_v31 = vld [vmem:[#allocation12 + $0x68] sm:$0xff]   ;;  %vm1318_vm7 = vcmask 1047559   ;;  %vm1331_vm9 = vcmask 64512   ;;  %vm1356_vm11 = vcmask 58368  }
  0x65   :  { %236 = vmatpush1.bf16.msra.mxu1 %v1619_v14  ;;  %v1631_v32 = vld [vmem:[#allocation12 + $0x28] sm:$0xff]   ;;  %v1632_v33 = vld [vmem:[#allocation12 + $0x70] sm:$0xff]   ;;  %v1634_v35 = vld [vmem:[#allocation12 + $0x78] sm:$0xff]  }
  0x66   :  { %1442 = vmatmul.mubr.msk.bf16.vlgmr.msra.gmra.mrb[0].mxu0 %vm152_vm0, %v1489_v9  ;;  %1571 = vmatprep.subr.bf16.mxu1 %v1620_v19  ;;  %v1633_v34 = vld [vmem:[#allocation12 + $0x30] sm:$0xff]   ;;  %v1635_v36 = vld [vmem:[#allocation12 + $0x38] sm:$0xff]   ;;  %v282_v50 = vld [vmem:[%s2350_s9] sm:$0x3] }
  0x67   :  { %318 = vmatpush1.bf16.msra.mxu0 %v1608_v8  ;;  %349 = vmatprep.mubr.bf16.mxu0 %v1815_v0  ;;  %v287_v56 = vrot.slane %v282_v50, %v2005_v45  ;;  %v291_v57 = vrot.slane %v282_v50, %v2008_v46 }
  0x68   :  { %319 = vmatprep.subr.bf16.mxu0 %v1613_v11  ;;  %1448 = vmatmul.mubr.msk.bf16.vlgmr.msra.gmra.mrb[0].mxu1 %vm152_vm0, %v1490_v21 }
  0x69   :  { %1579 = vmatpush3.bf16.msra.mxu1 %v1621_v20 }
  0x6a   :  { %1572 = vmatprep.subr.bf16.mxu1 %v1622_v23 }
  0x6b   :  { %320 = vmatpush1.bf16.msra.mxu0 %v1611_v15 }
  0x6c   :  { %1507 = vmatprep.subr.bf16.mxu0 %v1620_v19 }
  0x6d   :  { %1580 = vmatpush3.bf16.msra.mxu1 %v1623_v24 }
  0x6e   :  { %1453 = vmatmul.mubr.msk.bf16.vlgmr.msra.gmra.mrb[4].mxu0 %vm152_vm0, %v277_v22  ;;  %1573 = vmatprep.subr.bf16.mxu1 %v1624_v25 }
  0x6f   :  { %1508 = vmatpush3.bf16.msra.mxu0 %v1621_v20 }
  0x70   :  { %1509 = vmatprep.subr.bf16.mxu0 %v1622_v23 }
  0x71   :  { %1581 = vmatpush3.bf16.msra.mxu1 %v1625_v26 }
  0x72   :  { %1574 = vmatprep.subr.bf16.mxu1 %v1626_v27 }
  0x73   :  { %1510 = vmatpush3.bf16.msra.mxu0 %v1623_v24 }
  0x74   :  { %1511 = vmatprep.subr.bf16.mxu0 %v1624_v25 }
  0x75   :  { %1582 = vmatpush3.bf16.msra.mxu1 %v1627_v28 }
  0x76   :  { %1575 = vmatprep.subr.bf16.mxu1 %v1628_v29 }
  0x77   :  { %1512 = vmatpush3.bf16.msra.mxu0 %v1625_v26 }
  0x78   :  { %1513 = vmatprep.subr.bf16.mxu0 %v1626_v27 }
  0x79   :  { %1583 = vmatpush3.bf16.msra.mxu1 %v1629_v30 }
  0x7a   :  { %1576 = vmatprep.subr.bf16.mxu1 %v1630_v31 }
  0x7b   :  { %1514 = vmatpush3.bf16.msra.mxu0 %v1627_v28 }
  0x7c   :  { %1515 = vmatprep.subr.bf16.mxu0 %v1628_v29 }
  0x7d   :  { %1584 = vmatpush3.bf16.msra.mxu1 %v1631_v32 }
  0x7e   :  { %1577 = vmatprep.subr.bf16.mxu1 %v1632_v33 }
  0x7f   :  { %1516 = vmatpush3.bf16.msra.mxu0 %v1629_v30 }
  0x80   :  { %1517 = vmatprep.subr.bf16.mxu0 %v1630_v31 }
  0x81   :  { %1585 = vmatpush3.bf16.msra.mxu1 %v1633_v34 }
  0x82   :  { %1578 = vmatprep.subr.bf16.mxu1 %v1634_v35 }
  0x83   :  { %1518 = vmatpush3.bf16.msra.mxu0 %v1631_v32 }
  0x84   :  { %1519 = vmatprep.subr.bf16.mxu0 %v1632_v33 }
  0x85   :  { %1586 = vmatpush3.bf16.msra.mxu1 %v1635_v36 }
  0x87   :  { %1520 = vmatpush3.bf16.msra.mxu0 %v1633_v34 }
  0x88   :  { %1521 = vmatprep.subr.bf16.mxu0 %v1634_v35 }
  0x8b   :  { %1522 = vmatpush3.bf16.msra.mxu0 %v1635_v36 }
 0x139   :  { %v190_v42 = vpop.f32.mrb[0].mxu0 }
 0x13a   :  { %v192_v44 = vpop.f32.mrb[1].mxu0 }
 0x13b   :  { %v411_v47 = vcombine.low %v190_v42, %v192_v44  ;;  %v412_v48 = vcombine.high %v190_v42, %v192_v44  ;;  %v194_v49 = vpop.f32.mrb[2].mxu0  ;;  %v267_v62 = vpop.f32.mrb[0].mxu1 }
 0x13c   :  { %v196_v51 = vpop.f32.mrb[3].mxu0  ;;  %v269_v1 = vpop.f32.mrb[1].mxu1 }
 0x13d   :  { %v419_v52 = vrot.slane %v411_v47, %v2002_v43  ;;  %v426_v53 = vrot.slane %v412_v48, %v2002_v43  ;;  %v461_v54 = vcombine.low %v194_v49, %v196_v51  ;;  %v462_v55 = vcombine.high %v194_v49, %v196_v51  ;;  %v271_v7 = vpop.f32.mrb[2].mxu1 }
 0x13e   :  { %v273_v13 = vpop.f32.mrb[3].mxu1 }
 0x13f   :  { %v427_v58 = vcombine.high %v419_v52, %v419_v52  ;;  %v428_v59 = vcombine.high %v426_v53, %v426_v53  ;;  %v2018_v60 = vrot.slane %v419_v52, %v2002_v43  ;;  %v2021_v61 = vrot.slane %v426_v53, %v2002_v43 }
 0x140   :  { %v469_v63 = vrot.slane %v461_v54, %v2002_v43  ;;  %v476_v0 = vrot.slane %v462_v55, %v2002_v43 }
 0x141   :  { %v2026_v2 = vrot.slane %v427_v58, %v2002_v43  ;;  %v2029_v3 = vrot.slane %v428_v59, %v2002_v43  ;;  %v2033_v4 = vcombine.high %v2018_v60, %v2018_v60  ;;  %v2037_v5 = vcombine.high %v2021_v61, %v2021_v61  ;;  %v351_v6 = vpop.f32.mrb[4].mxu0 }
 0x142   :  { %v514_v8 = vrot.slane %v2018_v60, %v2005_v45  ;;  %v477_v9 = vcombine.high %v469_v63, %v469_v63  ;;  %v478_v10 = vcombine.high %v476_v0, %v476_v0  ;;  %v2042_v11 = vrot.slane %v469_v63, %v2002_v43  ;;  %v353_v12 = vpop.f32.mrb[5].mxu0 }
 0x143   :  { %v2045_v14 = vrot.slane %v476_v0, %v2002_v43  ;;  %v352_v15 = vadd.f32 %v351_v6, %v287_v56  ;;  %v354_v16 = vadd.f32 %v353_v12, %v291_v57  ;;  %v355_v17 = vpop.f32.mrb[6].mxu0  ;;  %v518_v18 = vrot.slane %v2018_v60, %v2008_v46 }
 0x144   :  { %v2050_v19 = vrot.slane %v477_v9, %v2002_v43  ;;  %v2053_v20 = vrot.slane %v478_v10, %v2002_v43  ;;  %v2057_v21 = vcombine.high %v2042_v11, %v2042_v11  ;;  %v356_v22 = vpop.f32.mrb[7].mxu0  ;;  %v526_v23 = vrot.slane %v2026_v2, %v2008_v46 }
 0x145   :  { %v2063_v24 = vcombine.high %v2045_v14, %v2045_v14  ;;  %v360_v25 = vcombine.low %v352_v15, %v354_v16  ;;  %v460_v26 = vcombine.high %v2029_v3, %v2029_v3  ;;  %v566_v27 = vrot.slane %v2037_v5, %v2008_v46 }
 0x146   :  { %v522_v28 = vrot.slane %v2026_v2, %v2005_v45  ;;  %v562_v29 = vrot.slane %v2037_v5, %v2005_v45  ;;  %v2075_v30 = vcombine.high %v2026_v2, %v2026_v2  ;;  %v534_v31 = vrot.slane %v2033_v4, %v2008_v46 }
 0x147   :  { %v367_v32 = vrot.slane %v360_v25, %v2002_v43  ;;  %v574_v33 = vrot.slane %v460_v26, %v2008_v46  ;;  %v570_v34 = vrot.slane %v460_v26, %v2005_v45  ;;  %v582_v35 = vrot.slane %v2042_v11, %v2008_v46 }
 0x148   :  { %v542_v36 = vrot.slane %v2075_v30, %v2008_v46  ;;  %v590_v38 = vrot.slane %v2050_v19, %v2008_v46  ;;  %v530_v39 = vrot.slane %v2033_v4, %v2005_v45  ;;  %v538_v41 = vrot.slane %v2075_v30, %v2005_v45 }
 0x149   :  { %v375_v42 = vrot.slane %v367_v32, %v2002_v43  ;;  %v368_v44 = vcombine.high %v367_v32, %v367_v32  ;;  %v578_v47 = vrot.slane %v2042_v11, %v2005_v45  ;;  %v586_v48 = vrot.slane %v2050_v19, %v2005_v45 }
 0x14a   :  { %v550_v49 = vrot.slane %v2021_v61, %v2008_v46  ;;  %v558_v50 = vrot.slane %v2029_v3, %v2008_v46  ;;  %v2103_v51 = vcombine.high %v2050_v19, %v2050_v19  ;;  %v598_v52 = vrot.slane %v2057_v21, %v2008_v46 }
 0x14b   :  { %v386_v53 = vrot.slane %v375_v42, %v2005_v45  ;;  %v390_v54 = vrot.slane %v375_v42, %v2008_v46  ;;  %v382_v55 = vrot.slane %v368_v44, %v2002_v43  ;;  %v546_v56 = vrot.slane %v2021_v61, %v2005_v45 }
 0x14c   :  { %v606_v57 = vrot.slane %v2103_v51, %v2008_v46  ;;  %v554_v58 = vrot.slane %v2029_v3, %v2005_v45  ;;  %v594_v59 = vrot.slane %v2057_v21, %v2005_v45  ;;  %v602_v60 = vrot.slane %v2103_v51, %v2005_v45 }
 0x14d   :  { %v2120_v63 = vadd.f32 %v386_v53, %v267_v62  ;;  %v404_v0 = vadd.f32 %v390_v54, %v269_v1  ;;  %v394_v2 = vrot.slane %v382_v55, %v2005_v45  ;;  %v398_v4 = vrot.slane %v382_v55, %v2008_v46 }
 0x14e   :  { %v614_v5 = vrot.slane %v2045_v14, %v2008_v46  ;;  %v622_v6 = vrot.slane %v2053_v20, %v2008_v46  ;;  %v610_v9 = vrot.slane %v2045_v14, %v2005_v45  ;;  %v618_v10 = vrot.slane %v2053_v20, %v2005_v45 }
 0x14f   :  { %v2132_v11 = vadd.f32 %v394_v2, %v271_v7  ;;  %v2134_v62 = vadd.f32 %v398_v4, %v273_v13  ;;  %v672_v1 = vadd.f32 %v518_v18, %v404_v0  ;;  %v674_v12 = vadd.f32 %v526_v23, %v404_v0 }
 0x150   :  { %v684_v15 = vadd.f32 %v566_v27, %v404_v0  ;;  %v686_v16 = vadd.f32 %v574_v33, %v404_v0  ;;  %v671_v17 = vadd.f32 %v514_v8, %v2120_v63  ;;  %v673_v19 = vadd.f32 %v522_v28, %v2120_v63 }
 0x151   :  { %v704_v22 = vmax.f32 %v672_v1, 0.0  ;;  %v706_v25 = vmax.f32 %v674_v12, 0.0  ;;  %v683_v26 = vadd.f32 %v562_v29, %v2120_v63  ;;  %v685_v30 = vadd.f32 %v570_v34, %v2120_v63 }
 0x152   :  { %v716_v32 = vmax.f32 %v684_v15, 0.0  ;;  %v718_v42 = vmax.f32 %v686_v16, 0.0  ;;  %v703_v7 = vmax.f32 %v671_v17, 0.0  ;;  %v705_v44 = vmax.f32 %v673_v19, 0.0 }
 0x153   :  { %v1492_v13 = vpack.c.bf16 %v706_v25, %v704_v22  ;;  %v715_v53 = vmax.f32 %v683_v26, 0.0  ;;  %v717_v18 = vmax.f32 %v685_v30, 0.0  ;;  %v676_v23 = vadd.f32 %v534_v31, %v404_v0 }
 0x154   :  { %v1498_v27 = vpack.c.bf16 %v718_v42, %v716_v32  ;;  %v1491_v33 = vpack.c.bf16 %v705_v44, %v703_v7  ;;  %v678_v54 = vadd.f32 %v542_v36, %v404_v0  ;;  %v688_v8 = vadd.f32 %v582_v35, %v2134_v62 }
 0x155   :  { %1030 = vmatprep.mubr.bf16.mxu0 %v1492_v13  ;;  %v1497_v28 = vpack.c.bf16 %v717_v18, %v715_v53  ;;  %v708_v55 = vmax.f32 %v676_v23, 0.0  ;;  %v690_v29 = vadd.f32 %v590_v38, %v2134_v62  ;;  %v675_v34 = vadd.f32 %v530_v39, %v2120_v63 }
 0x156   :  { %1054 = vmatprep.mubr.bf16.mxu1 %v1498_v27  ;;  %1031 = vmatmul.mubr.bf16.vlgmr.msra.gmra.mrb[8].mxu0 %v1491_v33  ;;  %v710_v2 = vmax.f32 %v678_v54, 0.0  ;;  %v720_v4 = vmax.f32 %v688_v8, 0.0  ;;  %v677_v1 = vadd.f32 %v538_v41, %v2120_v63  ;;  %v687_v31 = vadd.f32 %v578_v47, %v2132_v11 }
 0x157   :  { %1055 = vmatmul.mubr.bf16.vlgmr.msra.gmra.mrb[4].mxu1 %v1497_v28  ;;  %v722_v12 = vmax.f32 %v690_v29, 0.0  ;;  %v707_v36 = vmax.f32 %v675_v34, 0.0  ;;  %v689_v35 = vadd.f32 %v586_v48, %v2132_v11  ;;  %v680_v15 = vadd.f32 %v550_v49, %v404_v0 }
 0x158   :  { %v1494_v16 = vpack.c.bf16 %v710_v2, %v708_v55  ;;  %v709_v17 = vmax.f32 %v677_v1, 0.0  ;;  %v719_v19 = vmax.f32 %v687_v31, 0.0  ;;  %v682_v38 = vadd.f32 %v558_v50, %v404_v0 }
 0x159   :  { %v1500_v22 = vpack.c.bf16 %v722_v12, %v720_v4  ;;  %v721_v39 = vmax.f32 %v689_v35, 0.0  ;;  %v712_v25 = vmax.f32 %v680_v15, 0.0  ;;  %v692_v41 = vadd.f32 %v598_v52, %v2134_v62 }
 0x15a   :  { %1038 = vmatprep.mubr.bf16.mxu0 %v1494_v16  ;;  %v1493_v47 = vpack.c.bf16 %v709_v17, %v707_v36  ;;  %v714_v26 = vmax.f32 %v682_v38, 0.0  ;;  %v694_v48 = vadd.f32 %v606_v57, %v2134_v62  ;;  %v679_v49 = vadd.f32 %v546_v56, %v2120_v63 }
 0x15b   :  { %1062 = vmatprep.mubr.bf16.mxu1 %v1500_v22  ;;  %v1499_v50 = vpack.c.bf16 %v721_v39, %v719_v19  ;;  %v724_v0 = vmax.f32 %v692_v41, 0.0  ;;  %v681_v52 = vadd.f32 %v554_v58, %v2120_v63  ;;  %v691_v30 = vadd.f32 %v594_v59, %v2132_v11  ;;  %v2208_v41 = vld [vmem:[%s2353_s12] ss:$0 sm:$0xff] }
 0x15c   :  { %v1496_v32 = vpack.c.bf16 %v714_v26, %v712_v25  ;;  %v726_v57 = vmax.f32 %v694_v48, 0.0  ;;  %v711_v42 = vmax.f32 %v679_v49, 0.0  ;;  %v693_v61 = vadd.f32 %v602_v60, %v2132_v11 }
 0x15d   :  { %v713_v56 = vmax.f32 %v681_v52, 0.0  ;;  %v723_v7 = vmax.f32 %v691_v30, 0.0  ;;  %v696_v3 = vadd.f32 %v614_v5, %v2134_v62  ;;  %v698_v21 = vadd.f32 %v622_v6, %v2134_v62 }
 0x15e   :  { %1039 = vmatmul.mubr.bf16.gmra.mrb[12].mxu0 %v1493_v47  ;;  %v1502_v58 = vpack.c.bf16 %v726_v57, %v724_v0  ;;  %v725_v59 = vmax.f32 %v693_v61, 0.0  ;;  %v695_v51 = vadd.f32 %v610_v9, %v2132_v11  ;;  %v697_v60 = vadd.f32 %v618_v10, %v2132_v11 }
 0x15f   :  { %1063 = vmatmul.mubr.bf16.gmra.mrb[8].mxu1 %v1499_v50  ;;  %1046 = vmatprep.mubr.bf16.mxu0 %v1496_v32  ;;  %v1495_v63 = vpack.c.bf16 %v713_v56, %v711_v42  ;;  %v728_v5 = vmax.f32 %v696_v3, 0.0  ;;  %v730_v44 = vmax.f32 %v698_v21, 0.0  ;;  %v510_v6 = vcombine.high %v2053_v20, %v2053_v20 }
 0x160   :  { %1070 = vmatprep.mubr.bf16.mxu1 %v1502_v58  ;;  %v1501_v13 = vpack.c.bf16 %v725_v59, %v723_v7  ;;  %v727_v53 = vmax.f32 %v695_v51, 0.0  ;;  %v729_v18 = vmax.f32 %v697_v60, 0.0  ;;  %v630_v14 = vrot.slane %v2063_v24, %v2008_v46 }
 0x161   :  { %v1504_v9 = vpack.c.bf16 %v730_v44, %v728_v5  ;;  %v638_v23 = vrot.slane %v510_v6, %v2008_v46  ;;  %v626_v10 = vrot.slane %v2063_v24, %v2005_v45  ;;  %v634_v27 = vrot.slane %v510_v6, %v2005_v45 }
 0x162   :  { %v1503_v33 = vpack.c.bf16 %v729_v18, %v727_v53  ;;  %v700_v54 = vadd.f32 %v630_v14, %v2134_v62 }
 0x163   :  { %v702_v20 = vadd.f32 %v638_v23, %v2134_v62  ;;  %v699_v8 = vadd.f32 %v626_v10, %v2132_v11  ;;  %v701_v28 = vadd.f32 %v634_v27, %v2132_v11  ;;  %v2201_v62 = vld [vmem:[%s2352_s11] ss:$0 sm:$0xff] }
 0x164   :  { %v732_v55 = vmax.f32 %v700_v54, 0.0 }
 0x165   :  { %v734_v29 = vmax.f32 %v702_v20, 0.0  ;;  %v731_v34 = vmax.f32 %v699_v8, 0.0  ;;  %v733_v2 = vmax.f32 %v701_v28, 0.0 }
 0x166   :  { %1047 = vmatmul.mubr.bf16.gmra.mrb[16].mxu0 %v1495_v63 }
 0x167   :  { %1071 = vmatmul.mubr.bf16.gmra.mrb[12].mxu1 %v1501_v13  ;;  %v1506_v4 = vpack.c.bf16 %v734_v29, %v732_v55  ;;  %v1505_v1 = vpack.c.bf16 %v733_v2, %v731_v34 }
 0x168   :  { %1078 = vmatprep.mubr.bf16.mxu1 %v1504_v9 }
 0x16f   :  { %1079 = vmatmul.mubr.bf16.gmra.mrb[16].mxu1 %v1503_v33 }
 0x170   :  { %1086 = vmatprep.mubr.bf16.mxu1 %v1506_v4 }
 0x177   :  { %1087 = vmatmul.mubr.bf16.gmra.mrb[20].mxu1 %v1505_v1 }
 0x229   :  { %v1523_v24 = vpop.f32.mrb[8].mxu0 }
 0x22a   :  { %v1541_v31 = vpop.f32.mrb[4].mxu1  ;;  %v1524_v12 = vpop.f32.mrb[9].mxu0 }
 0x22b   :  { %v1525_v11 = vadd.f32 %v1524_v12, %v1523_v24  ;;  %v1542_v36 = vpop.f32.mrb[5].mxu1  ;;  %v1526_v35 = vpop.f32.mrb[10].mxu0 }
 0x22c   :  { %v1543_v15 = vadd.f32 %v1542_v36, %v1541_v31  ;;  %v1544_v16 = vpop.f32.mrb[6].mxu1  ;;  %v1527_v17 = vpop.f32.mrb[11].mxu0 }
 0x22d   :  { %v1528_v19 = vadd.f32 %v1527_v17, %v1526_v35  ;;  %v1545_v38 = vpop.f32.mrb[7].mxu1  ;;  %v1033_v22 = vadd.f32 %v1525_v11, %v2201_v62 }
 0x22e   :  { %v1057_v39 = vadd.f32 %v1543_v15, %v2201_v62  ;;  %v1546_v25 = vadd.f32 %v1545_v38, %v1544_v16 }
 0x22f   :  { %v1095_v47 = vmax.f32 %v1033_v22, 0.0  ;;  %v1036_v48 = vadd.f32 %v1528_v19, %v2201_v62 }
 0x230   :  { %v1101_v26 = vmax.f32 %v1057_v39, 0.0  ;;  %v1060_v3 = vadd.f32 %v1546_v25, %v2201_v62 }
 0x231   :  { %v1529_v49 = vpop.f32.mrb[12].mxu0  ;;  %v1118_v50 = vmul.f32 %v2208_v41, %v1095_v47  ;;  %v1096_v7 = vmax.f32 %v1036_v48, 0.0 }
 0x232   :  { %v1547_v0 = vpop.f32.mrb[8].mxu1  ;;  %v1530_v52 = vpop.f32.mrb[13].mxu0  ;;  %v1124_v59 = vmul.f32 %v2208_v41, %v1101_v26  ;;  %v1102_v44 = vmax.f32 %v1060_v3, 0.0 }
 0x233   :  { %v1531_v30 = vadd.f32 %v1530_v52, %v1529_v49  ;;  %v1548_v32 = vpop.f32.mrb[9].mxu1  ;;  %v1532_v57 = vpop.f32.mrb[14].mxu0  ;;  %1134 = vadd.xlane.f32.xlu0 %v1118_v50  ;;  %v1119_v53 = vmul.f32 %v2208_v41, %v1096_v7 }
 0x234   :  { %v1549_v42 = vadd.f32 %v1548_v32, %v1547_v0  ;;  %v1550_v61 = vpop.f32.mrb[10].mxu1  ;;  %v1533_v56 = vpop.f32.mrb[15].mxu0  ;;  %v1125_v2 = vmul.f32 %v2208_v41, %v1102_v44 }
 0x235   :  { %v1534_v21 = vadd.f32 %v1533_v56, %v1532_v57  ;;  %v1551_v58 = vpop.f32.mrb[11].mxu1  ;;  %v1041_v6 = vadd.f32 %v1531_v30, %v2201_v62 }
 0x236   :  { %v1552_v51 = vadd.f32 %v1551_v58, %v1550_v61  ;;  %v1065_v60 = vadd.f32 %v1549_v42, %v2201_v62  ;;  %v1488_v61 = vld.sshfl [vmem:[%s2342_s1] sm:$0x11 pattern:$0x75316420] }
 0x237   :  { %1146 = vadd.xlane.f32.xlu0 %v1124_v59  ;;  %v1097_v28 = vmax.f32 %v1041_v6, 0.0  ;;  %v1044_v55 = vadd.f32 %v1534_v21, %v2201_v62 }
 0x238   :  { %v1068_v63 = vadd.f32 %v1552_v51, %v2201_v62  ;;  %v1103_v5 = vmax.f32 %v1065_v60, 0.0  ;;  %v1191_v60 = vcombine.high %v1488_v61, %v1488_v61 }
 0x239   :  { %v1535_v13 = vpop.f32.mrb[16].mxu0  ;;  %v1098_v11 = vmax.f32 %v1044_v55, 0.0  ;;  %v1120_v35 = vmul.f32 %v2208_v41, %v1097_v28 }
 0x23a   :  { %v1104_v18 = vmax.f32 %v1068_v63, 0.0  ;;  %v1553_v14 = vpop.f32.mrb[12].mxu1  ;;  %v1536_v9 = vpop.f32.mrb[17].mxu0  ;;  %v1126_v23 = vmul.f32 %v2208_v41, %v1103_v5 }
 0x23b   :  { %v1537_v10 = vadd.f32 %v1536_v9, %v1535_v13  ;;  %v1554_v27 = vpop.f32.mrb[13].mxu1  ;;  %v1538_v33 = vpop.f32.mrb[18].mxu0  ;;  %1136 = vadd.xlane.f32.xlu0 %v1119_v53  ;;  %v1121_v26 = vmul.f32 %v2208_v41, %v1098_v11  ;;  %v1205_v13 = vrot.slane %v1191_v60, %v2002_v43 }
 0x23c   :  { %v1555_v54 = vadd.f32 %v1554_v27, %v1553_v14  ;;  %v1556_v20 = vpop.f32.mrb[14].mxu1  ;;  %1150 = vadd.xlane.f32.xlu1 %v1126_v23  ;;  %v1539_v8 = vpop.f32.mrb[19].mxu0  ;;  %v1127_v24 = vmul.f32 %v2208_v41, %v1104_v18  ;;  %v1198_v23 = vrot.slane %v1488_v61, %v2002_v43 }
 0x23d   :  { %v1540_v29 = vadd.f32 %v1539_v8, %v1538_v33  ;;  %v1557_v34 = vpop.f32.mrb[15].mxu1  ;;  %v1049_v36 = vadd.f32 %v1537_v10, %v2201_v62  ;;  %v1215_v9 = vrot.slane %v1205_v13, %v2005_v45 }
 0x23e   :  { %v1073_v4 = vadd.f32 %v1555_v54, %v2201_v62  ;;  %v1558_v1 = vadd.f32 %v1557_v34, %v1556_v20  ;;  %v1211_v10 = vrot.slane %v1198_v23, %v2005_v45  ;;  %v2256_v34 = vstv %s2341_s0  ;;  %s1817_s0 = smov [#allocation14]  }
 0x23f   :  { %1148 = vadd.xlane.f32.xlu0 %v1125_v2  ;;  %v1099_v39 = vmax.f32 %v1049_v36, 0.0  ;;  %v1052_v25 = vadd.f32 %v1540_v29, %v2201_v62  ;;  %v2251_v29 = vand.u32 127, %v284_v37 }
 0x240   :  { %v1105_v31 = vmax.f32 %v1073_v4, 0.0  ;;  %v1076_v12 = vadd.f32 %v1558_v1, %v2201_v62  ;;  %1152 = vadd.xlane.f32.xlu1 %v1127_v24 }
 0x241   :  { %v1100_v30 = vmax.f32 %v1052_v25, 0.0  ;;  %v1122_v32 = vmul.f32 %v2208_v41, %v1099_v39 }
 0x242   :  { %v1106_v15 = vmax.f32 %v1076_v12, 0.0  ;;  %v1559_v16 = vpop.f32.mrb[16].mxu1  ;;  %v1128_v17 = vmul.f32 %v2208_v41, %v1105_v31  ;;  %v2262_v31 = vsub.s32 %v2251_v29, %v1999_v40 }
 0x243   :  { %v1560_v19 = vpop.f32.mrb[17].mxu1  ;;  %1138 = vadd.xlane.f32.xlu0 %v1120_v35  ;;  %v1123_v51 = vmul.f32 %v2208_v41, %v1100_v30 }
 0x244   :  { %v1561_v38 = vadd.f32 %v1560_v19, %v1559_v16  ;;  %v1562_v22 = vpop.f32.mrb[18].mxu1  ;;  %1154 = vadd.xlane.f32.xlu1 %v1128_v17  ;;  %v1129_v50 = vmul.f32 %v2208_v41, %v1106_v15 }
 0x245   :  { %v1563_v47 = vpop.f32.mrb[19].mxu1 }
 0x246   :  { %v1081_v48 = vadd.f32 %v1561_v38, %v2201_v62  ;;  %v1564_v49 = vadd.f32 %v1563_v47, %v1562_v22 }
 0x247   :  { %1140 = vadd.xlane.f32.xlu0 %v1121_v26 }
 0x248   :  { %v1107_v0 = vmax.f32 %v1081_v48, 0.0  ;;  %v1084_v52 = vadd.f32 %v1564_v49, %v2201_v62  ;;  %1156 = vadd.xlane.f32.xlu1 %v1129_v50 }
 0x24a   :  { %v1108_v57 = vmax.f32 %v1084_v52, 0.0  ;;  %v1565_v42 = vpop.f32.mrb[20].mxu1  ;;  %v1130_v56 = vmul.f32 %v2208_v41, %v1107_v0 }
 0x24b   :  { %v1566_v7 = vpop.f32.mrb[21].mxu1  ;;  %1142 = vadd.xlane.f32.xlu0 %v1122_v32 }
 0x24c   :  { %v1567_v3 = vadd.f32 %v1566_v7, %v1565_v42  ;;  %v1568_v21 = vpop.f32.mrb[22].mxu1  ;;  %v1131_v58 = vmul.f32 %v2208_v41, %v1108_v57 }
 0x24d   :  { %v1569_v59 = vpop.f32.mrb[23].mxu1 }
 0x24e   :  { %v1089_v63 = vadd.f32 %v1567_v3, %v2201_v62  ;;  %v1570_v5 = vadd.f32 %v1569_v59, %v1568_v21 }
 0x24f   :  { %1144 = vadd.xlane.f32.xlu0 %v1123_v51 }
 0x250   :  { %v1109_v44 = vmax.f32 %v1089_v63, 0.0  ;;  %v1092_v6 = vadd.f32 %v1570_v5, %v2201_v62  ;;  %v1346_v62 = vld [vmem:[%s2343_s2] sm:$0x3]  ;;  %s1422_s2 = sshll.u32 %s1817_s0, 4  ;;  %s1423_s2 = int_to_ptr.vmem [resolvable:$true] %s1422_s2 }
 0x251   :  { %s1752_s27 = scalar_lea.vmem %s1423_s2, 32  ;;  %p1757_p13 = scmp.lt.s32.totalorder %s1423_s2, %s1423_s2 }
 0x252   :  { %v1110_v53 = vmax.f32 %v1092_v6, 0.0  ;;  %v1132_v18 = vmul.f32 %v2208_v41, %v1109_v44  ;;  %p1753_p12 = scmp.ne.s32.totalorder %s1423_s2, %s1752_s27  ;;  %p1758_p0 = scmp.lt.s32.totalorder %s1752_s27, %s1752_s27 }
 0x254   :  { %v1133_v14 = vmul.f32 %v2208_v41, %v1110_v53  ;;  %p1759_p1 = por %p1758_p0, %p1757_p13 }
 0x256   :  { %p1760_p2 = pnand %p1759_p1, %p1753_p12 }
 0x259   :  { %1220 = vperm.xlu1 %1601, %v1215_v9  }
 0x265   :  { %1217 = vperm.xlu0 %1600, %v1211_v10  }
 0x27d   :  { %1158 = vadd.xlane.f32.xlu1 %v1130_v56 }
 0x281   :  { %1160 = vadd.xlane.f32.xlu1 %v1131_v58 }
 0x285   :  { %1162 = vadd.xlane.f32.xlu1 %v1132_v18 }
 0x289   :  { %1164 = vadd.xlane.f32.xlu1 %v1133_v14 }
 0x29a   :  { %1348 = vperm.xlu1 %1601, %v1346_v62  }
 0x2c0   :  { %v1135_v27 = vpop.xlane.xlu0 %1134 }
 0x2c1   :  { %v1167_v12 = vadd.f32 %v2256_v34, %v1135_v27 }
 0x2c3   :  { %v1245_v17 = vrot.slane %v1167_v12, %v2262_v31 }
 0x2c4   :  { %v1147_v33 = vpop.xlane.xlu0 %1146 }
 0x2c5   :  { %v1173_v25 = vadd.f32 %v2256_v34, %v1147_v33 }
 0x2c7   :  { %v1269_v52 = vrot.slane %v1173_v25, %v2262_v31 }
 0x2c8   :  { %v1137_v41 = vpop.xlane.xlu0 %1136 }
 0x2c9   :  { %v1151_v8 = vpop.xlane.xlu1 %1150  ;;  %v1168_v4 = vadd.f32 %v2256_v34, %v1137_v41 }
 0x2ca   :  { %v1175_v58 = vadd.f32 %v2256_v34, %v1151_v8 }
 0x2cb   :  { %v1249_v36 = vrot.slane %v1168_v4, %v2262_v31 }
 0x2cc   :  { %v1149_v54 = vpop.xlane.xlu0 %1148  ;;  %v1277_v13 = vrot.slane %v1175_v58, %v2262_v31 }
 0x2cd   :  { %v1153_v43 = vpop.xlane.xlu1 %1152  ;;  %v1307_v39 = vsel %vm1306_vm1, %v1249_v36, %v1245_v17  ;;  %v1174_v50 = vadd.f32 %v2256_v34, %v1149_v54 }
 0x2ce   :  { %v1176_v61 = vadd.f32 %v2256_v34, %v1153_v43 }
 0x2cf   :  { %v1273_v42 = vrot.slane %v1174_v50, %v2262_v31 }
 0x2d0   :  { %v1139_v20 = vpop.xlane.xlu0 %1138  ;;  %v1281_v60 = vrot.slane %v1176_v61, %v2262_v31 }
 0x2d1   :  { %v1155_v2 = vpop.xlane.xlu1 %1154  ;;  %v1169_v1 = vadd.f32 %v2256_v34, %v1139_v20 }
 0x2d2   :  { %v1177_v7 = vadd.f32 %v2256_v34, %v1155_v2  ;;  %v1320_v23 = vsel %vm1306_vm1, %v1281_v60, %v1277_v13 }
 0x2d3   :  { %v1253_v15 = vrot.slane %v1169_v1, %v2262_v31 }
 0x2d4   :  { %v1141_v28 = vpop.xlane.xlu0 %1140  ;;  %v1285_v44 = vrot.slane %v1177_v7, %v2262_v31 }
 0x2d5   :  { %v1170_v37 = vadd.f32 %v2256_v34, %v1141_v28  ;;  %v1157_v16 = vpop.xlane.xlu1 %1156  ;;  %v1309_v47 = vsel %vm1308_vm2, %v1253_v15, %v1307_v39 }
 0x2d6   :  { %v1178_v59 = vadd.f32 %v2256_v34, %v1157_v16  ;;  %v1321_v62 = vsel %vm1308_vm2, %v1285_v44, %v1320_v23 }
 0x2d7   :  { %v1257_v19 = vrot.slane %v1170_v37, %v2262_v31 }
 0x2d8   :  { %v1143_v55 = vpop.xlane.xlu0 %1142  ;;  %v1289_v53 = vrot.slane %v1178_v59, %v2262_v31 }
 0x2d9   :  { %v1171_v11 = vadd.f32 %v2256_v34, %v1143_v55  ;;  %v1311_v26 = vsel %vm1310_vm3, %v1257_v19, %v1309_v47  ;;  %v1221_v48 = vpop.permute.xlu1 %1220 }
 0x2da   :  { %v1322_v41 = vsel %vm1310_vm3, %v1289_v53, %v1321_v62  ;;  %vm1223_vm10 = vcmp.lt.s32.totalorder %v1999_v40, %v1221_v48 }
 0x2db   :  { %v1261_v38 = vrot.slane %v1171_v11, %v2262_v31 }
 0x2dc   :  { %v1145_v24 = vpop.xlane.xlu0 %1144 }
 0x2dd   :  { %v1172_v35 = vadd.f32 %v2256_v34, %v1145_v24  ;;  %v1313_v49 = vsel %vm1312_vm4, %v1261_v38, %v1311_v26 }
 0x2df   :  { %v1265_v22 = vrot.slane %v1172_v35, %v2262_v31 }
 0x2e1   :  { %v1315_v0 = vsel %vm1314_vm5, %v1265_v22, %v1313_v49 }
 0x2e2   :  { %v1317_v32 = vsel %vm1316_vm6, %v1269_v52, %v1315_v0 }
 0x2e3   :  { %v1319_v56 = vsel %vm1318_vm7, %v1273_v42, %v1317_v32 }
 0x2e4   :  { %v1218_v30 = vpop.permute.xlu0 %1217 }
 0x2e5   :  { %vm1222_vm8 = vcmp.lt.s32.totalorder %v1999_v40, %v1218_v30 }
 0x2e6   :  { %v1329_v3 = vsel %vm1222_vm8, %v1319_v56, -4194304.0 }
 0x2e7   :  { %v1332_v63 = vsel %vm1331_vm9, %v1329_v3, -inf }
 0x2e8   :  { %v1333_v14 = vrot.slane %v1332_v63, 4 }
 0x2ea   :  { %v1334_v20 = vmax.f32 %v1332_v63, %v1333_v14 }
 0x2ec   :  { %v1335_v4 = vrot.slane %v1334_v20, 2 }
 0x2ee   :  { %v1336_v37 = vmax.f32 %v1334_v20, %v1335_v4 }
 0x2f0   :  { %v1337_v36 = vrot.slane %v1336_v37, 1 }
 0x2f2   :  { %v1338_v17 = vmax.f32 %v1336_v37, %v1337_v36 }
 0x30a   :  { %v1159_v57 = vpop.xlane.xlu1 %1158 }
 0x30b   :  { %v1179_v51 = vadd.f32 %v2256_v34, %v1159_v57 }
 0x30d   :  { %v1293_v9 = vrot.slane %v1179_v51, %v2262_v31 }
 0x30e   :  { %v1161_v21 = vpop.xlane.xlu1 %1160 }
 0x30f   :  { %v1180_v5 = vadd.f32 %v2256_v34, %v1161_v21  ;;  %v1323_v8 = vsel %vm1312_vm4, %v1293_v9, %v1322_v41 }
 0x311   :  { %v1297_v10 = vrot.slane %v1180_v5, %v2262_v31 }
 0x312   :  { %v1163_v6 = vpop.xlane.xlu1 %1162 }
 0x313   :  { %v1181_v18 = vadd.f32 %v2256_v34, %v1163_v6  ;;  %v1324_v28 = vsel %vm1314_vm5, %v1297_v10, %v1323_v8 }
 0x315   :  { %v1301_v27 = vrot.slane %v1181_v18, %v2262_v31 }
 0x316   :  { %v1165_v33 = vpop.xlane.xlu1 %1164 }
 0x317   :  { %v1182_v54 = vadd.f32 %v2256_v34, %v1165_v33  ;;  %v1325_v55 = vsel %vm1316_vm6, %v1301_v27, %v1324_v28 }
 0x319   :  { %v1305_v43 = vrot.slane %v1182_v54, %v2262_v31 }
 0x31a   :  { %v1349_v16 = vpop.permute.xlu1 %1348 }
 0x31b   :  { %v1326_v2 = vsel %vm1318_vm7, %v1305_v43, %v1325_v55  ;;  %vm1350_vm12 = vcmp.lt.s32.totalorder %v2251_v29, %v1349_v16 }
 0x31c   :  { %v1330_v1 = vsel %vm1223_vm10, %v1326_v2, -4194304.0 }
 0x31d   :  { %v1339_v24 = vsel %vm1331_vm9, %v1330_v1, -inf }
 0x31e   :  { %v1340_v12 = vrot.slane %v1339_v24, 4 }
 0x320   :  { %v1341_v34 = vmax.f32 %v1339_v24, %v1340_v12 }
 0x322   :  { %v1342_v11 = vrot.slane %v1341_v34, 2 }
 0x324   :  { %v1343_v35 = vmax.f32 %v1341_v34, %v1342_v11 }
 0x326   :  { %v1344_v15 = vrot.slane %v1343_v35, 1 }
 0x328   :  { %v1345_v31 = vmax.f32 %v1343_v35, %v1344_v15 }
 0x32a   :  { %v1353_v19 = vsel %vm1306_vm1, %v1345_v31, %v1338_v17 }
 0x32b   :  { %v1355_v40 = vsel %vm1350_vm12, %v1353_v19, -4194304.0 }
 0x32c   :  { %v1357_v38 = vsel %vm1356_vm11, %v1355_v40, -inf  ;;  %1405 = vst.msk [vmem:[#allocation14] sm:$0x3] %vm1356_vm11, %v1355_v40 }
 0x32d   :  { %1358 = vmax.xlane.f32.xlu1 %v1357_v38 }
 0x3ba   :  { %v1359_v22 = vpop.xlane.xlu1 %1358 }
 0x3bb   :  { %v1360_v39 = vsub.f32 %v1355_v40, %v1359_v22 }
 0x3bd   :  { %v1361_v25 = vmul.f32 1.442695, %v1360_v39 }
 0x3bf   :  { %1636 = vpow2.f32 %v1361_v25 }
 0x3c9   :  { %v1637_v47 = vpop.eup %1636 }
 0x3ca   :  { %v1363_v26 = vsel %vm1356_vm11, %v1637_v47, 0.0 }
 0x3cb   :  { %1364 = vadd.xlane.f32.xlu0 %v1363_v26 }
 0x458   :  { %v1365_v48 = vpop.xlane.xlu0 %1364 }
 0x459   :  { %1638 = vrcp.f32 %v1365_v48 }
 0x463   :  { %v1639_v49 = vpop.eup %1638 }
 0x464   :  { %v1367_v50 = vmul.f32 %v1639_v49, %v1637_v47 }
 0x466   :  { %v1371_v0 = vrot.slane %v1367_v50, %v2005_v45  ;;  %v1378_v29 = vrot.slane %v1367_v50, %v2008_v46 }
 0x468   :  { %1373 = vbcast.lane.b32.xlu1 %v1371_v0, 256 }
 0x46c   :  { %1380 = vbcast.lane.b32.xlu1 %v1378_v29, 256 }
 0x46d   :  { %1763 = shalt.err (!%p1760_p2)
}
 0x46e   :  { %s1764_s26 = scalar_lea.hbm %s2355_s14, 32 }
 0x46f   :  { %p1765_p3 = scmp.ne.s32.totalorder %s2355_s14, %s1764_s26  ;;  %p1768_p4 = scmp.lt.u32.totalorder %s1764_s26, %s2355_s14 }
 0x471   :  { %p1770_p5 = pnand %p1768_p4, %p1765_p3 }
 0x473   :  { %1773 = shalt.err (!%p1770_p5)
}
 0x474   :  { %1425 = dma.vmem_to_hbm [thread:$0]  %s1423_s2, 32, %s2355_s14, [#allocation15]   ;;  %vm1384_vm13 = vcmask 523264   ;;  %v1640_v46 = vld [vmem:[#allocation7] sm:$0xff]  ;;  %v1641_v42 = vld [vmem:[#allocation7 + $0x8] sm:$0xff]  ;;  %vm1403_vm14 = vcmask 517120  }
 0x475   :  { %s1818_s14 = smov [#allocation13]  }
 0x476   :  { %s1412_s4 = sshll.u32 %s1818_s14, 4  ;;  %s1413_s4 = int_to_ptr.vmem [resolvable:$true] %s1412_s4 }
 0x477   :  { %s1774_s24 = scalar_lea.vmem %s1413_s4, 32  ;;  %p1779_p7 = scmp.lt.s32.totalorder %s1413_s4, %s1413_s4 }
 0x478   :  { %p1775_p6 = scmp.ne.s32.totalorder %s1413_s4, %s1774_s24  ;;  %p1780_p8 = scmp.lt.s32.totalorder %s1774_s24, %s1774_s24 }
 0x47a   :  { %p1781_p9 = por %p1780_p8, %p1779_p7 }
 0x47c   :  { %p1782_p10 = pnand %p1781_p9, %p1775_p6 }
 0x4da   :  { %v1374_v45 = vpop.permute.xlu1 %1373 }
 0x4db   :  { %v1382_v52 = vmul.f32 %v1640_v46, %v1374_v45 }
 0x4dd   :  { %v1385_v30 = vsel %vm1384_vm13, %v1382_v52, 0.0 }
 0x4de   :  { %v1386_v32 = vrot.slane %v1385_v30, 4  ;;  %v1381_v57 = vpop.permute.xlu1 %1380 }
 0x4df   :  { %v1383_v61 = vmul.f32 %v1641_v42, %v1381_v57 }
 0x4e0   :  { %v1387_v56 = vadd.f32 %v1386_v32, %v1385_v30 }
 0x4e1   :  { %v1392_v7 = vsel %vm1384_vm13, %v1383_v61, 0.0 }
 0x4e2   :  { %v1388_v3 = vrot.slane %v1387_v56, 2  ;;  %v1393_v21 = vrot.slane %v1392_v7, 4 }
 0x4e4   :  { %v1389_v58 = vadd.f32 %v1388_v3, %v1387_v56  ;;  %v1394_v59 = vadd.f32 %v1393_v21, %v1392_v7 }
 0x4e6   :  { %v1395_v51 = vrot.slane %v1394_v59, 2  ;;  %v1390_v60 = vrot.slane %v1389_v58, 1 }
 0x4e8   :  { %v1396_v63 = vadd.f32 %v1395_v51, %v1394_v59  ;;  %v1391_v44 = vadd.f32 %v1390_v60, %v1389_v58 }
 0x4ea   :  { %v1397_v5 = vrot.slane %v1396_v63, 1 }
 0x4ec   :  { %v1398_v6 = vadd.f32 %v1397_v5, %v1396_v63 }
 0x4ee   :  { %v1401_v13 = vsel %vm1306_vm1, %v1398_v6, %v1391_v44 }
 0x4ef   :  { %1404 = vst.msk [vmem:[#allocation13] sm:$0x3] %vm1403_vm14, %v1401_v13 }
 0x4f0   :  { %1785 = shalt.err (!%p1782_p10)
}
 0x4f1   :  { %s1786_s21 = scalar_lea.hbm %s2354_s13, 32 }
 0x4f2   :  { %p1787_p11 = scmp.ne.s32.totalorder %s2354_s13, %s1786_s21  ;;  %p1790_p12 = scmp.lt.u32.totalorder %s1786_s21, %s2354_s13 }
 0x4f4   :  { %p1792_p13 = pnand %p1790_p12, %p1787_p11 }
 0x4f6   :  { %1795 = shalt.err (!%p1792_p13)
}
 0x4f7   :  { %1415 = dma.vmem_to_hbm [thread:$0]  %s1413_s4, 32, %s2354_s13, [#allocation6]  }
 0x4f8   :  { %1802 = dma.done.wait [#allocation6], 32  }
 0x4f9   :  { %1803 = vsyncadd [#allocation6], 4294967264 }
 0x4fa   :  { %1804 = dma.done.wait [#allocation15], 32  }
 0x4fb   :  { %1805 = vsyncadd [#allocation15], 4294967264 }
 0x4fc   :  { %1432 = vsyncpa [#allocation5], 1 }
 0x4fd   :  { %1433 = vsyncpa [#allocation8], 1 }
 0x4fe   :  { %1434 = vsyncpa [#allocation11], 1 }
 0x4ff   :  { %1435 = vsyncpa [#allocation6], 1 }
 0x500   :  { %1436 = vsyncpa [#allocation15], 1 }

</bundles_post_ra>
